<compile_context>
chip_gen: v7x
topology: tpu7x:2x2x1
jax: 0.10.0
libtpu: 0.0.40
codegen_flags: <defaults>
</compile_context>

<pallas_src>
import functools

import jax
import jax.numpy as jnp
from jax.experimental import pallas as pl
from jax.experimental.pallas import tpu as pltpu

_LANE = 128


def _posshrink_kernel(x_ref, o_ref, *, lambd):
    # Pure VPU elementwise hot path: subtract threshold, clamp at zero.
    x = x_ref[...]
    thr = jnp.asarray(lambd, dtype=x.dtype)
    o_ref[...] = jnp.maximum(x - thr, jnp.zeros((), dtype=x.dtype))


def _sublane_multiple(dtype) -> int:
    # f32 -> 8, bf16/f16 -> 16, int8/fp8 -> 32 (packed dtypes pack along sublanes).
    itemsize = jnp.dtype(dtype).itemsize
    return {4: 8, 2: 16, 1: 32}.get(itemsize, 8)


def _pick_block_rows(rows, cols, itemsize, sublane, *,
                     target_bytes=2 << 20, min_blocks=8):
    """Pick a block row count: ~2 MiB per block, >= min_blocks blocks when possible."""
    if rows <= sublane:
        return rows  # single full-array block; no (8,128) divisibility needed
    target_rows = max(sublane, (target_bytes // (cols * itemsize)) // sublane * sublane)
    br = min(target_rows, rows)
    # Keep enough parallel grid blocks to shard across the 2 TCs on v7x.
    if rows >= min_blocks * sublane:
        per_block = -(-rows // min_blocks)                       # ceil
        per_block = max(sublane, -(-per_block // sublane) * sublane)
        br = min(br, per_block)
    if br >= rows:
        return rows
    return max(sublane, (br // sublane) * sublane)


def positive_shrink(x, lambd: float = 0.5):
    """relu(x - lambd), computed in a Pallas TPU kernel. Accepts any shape."""
    orig_shape = x.shape
    dtype = x.dtype
    total = int(x.size)
    if total == 0:
        return x

    itemsize = jnp.dtype(dtype).itemsize
    sublane = _sublane_multiple(dtype)

    # Lane-dense 2D layout: cols is a multiple of 128 (up to 1024).
    lanes = pl.cdiv(total, _LANE)
    cols = _LANE * min(8, lanes)
    rows = pl.cdiv(total, cols)

    br = _pick_block_rows(rows, cols, itemsize, sublane)
    grid_n = pl.cdiv(rows, br)
    padded_rows = grid_n * br
    padded_total = padded_rows * cols

    flat = x.reshape(-1)
    if padded_total > total:
        flat = jnp.pad(flat, (0, padded_total - total))
    x2d = flat.reshape(padded_rows, cols)

    kernel = functools.partial(_posshrink_kernel, lambd=lambd)
    block_bytes = br * cols * itemsize
    # in + out specs each double-buffer => ~4x block; add generous headroom
    # while staying far under every generation's physical VMEM.
    vmem_limit = max(4 * block_bytes + (8 << 20), 16 << 20)

    out2d = pl.pallas_call(
        kernel,
        out_shape=jax.ShapeDtypeStruct((padded_rows, cols), dtype),
        grid_spec=pltpu.PrefetchScalarGridSpec(
            num_scalar_prefetch=0,
            grid=(grid_n,),
            in_specs=[pl.BlockSpec((br, cols), lambda i: (i, 0))],
            out_specs=pl.BlockSpec((br, cols), lambda i: (i, 0)),
        ),
        compiler_params=pltpu.CompilerParams(
            dimension_semantics=("parallel",),
            vmem_limit_bytes=int(vmem_limit),
        ),
    )(x2d)

    return out2d.reshape(-1)[:total].reshape(orig_shape)


if __name__ == "__main__":
    key = jax.random.PRNGKey(0)
    lambd = 0.5

    # Small NCHW input consistent with the module's typical usage.
    x_small = jax.random.normal(key, (2, 4, 16, 16), dtype=jnp.float32)
    y_small = jax.block_until_ready(positive_shrink(x_small, lambd=lambd))
    ref_small = jnp.maximum(x_small - lambd, 0.0)
    assert y_small.shape == x_small.shape and y_small.dtype == x_small.dtype
    assert jnp.allclose(y_small, ref_small, atol=1e-6, rtol=1e-6)

    # Slightly larger input to exercise the multi-block (tiled, parallel) path.
    x_big = jax.random.normal(jax.random.PRNGKey(1), (8, 16, 32, 32),
                              dtype=jnp.float32)
    y_big = jax.block_until_ready(positive_shrink(x_big, lambd=lambd))
    ref_big = jnp.maximum(x_big - lambd, 0.0)
    assert y_big.shape == x_big.shape and y_big.dtype == x_big.dtype
    assert jnp.allclose(y_big, ref_big, atol=1e-6, rtol=1e-6)

    print("KERNEL_OK")
</pallas_src>

<mosaic_0001>
module attributes {stable_mosaic.version = 11 : i64} {
  func.func @_posshrink_kernel(%arg0: i32, %arg1: memref<2x1024xf32, #tpu.memory_space<vmem>>, %arg2: memref<2x1024xf32, #tpu.memory_space<vmem>>) attributes {dimension_semantics = [#tpu.dimension_semantics<parallel>], iteration_bounds = array<i64: 1>, scalar_prefetch = 0 : i64, scratch_operands = 0 : i64, tpu.core_type = #tpu.core_type<tc>, window_params = [{transform_indices = @transform_0, window_bounds = array<i64: 2, 1024>}, {transform_indices = @transform_1, window_bounds = array<i64: 2, 1024>}]} {
    %c0 = arith.constant 0 : index
    %c0_0 = arith.constant 0 : index
    %0 = vector.load %arg1[%c0, %c0_0] : memref<2x1024xf32, #tpu.memory_space<vmem>>, vector<2x1024xf32>
    %cst = arith.constant 5.000000e-01 : f32
    %1 = vector.broadcast %cst : f32 to vector<2x1024xf32>
    %2 = arith.subf %0, %1 : vector<2x1024xf32>
    %cst_1 = arith.constant 0.000000e+00 : f32
    %3 = vector.broadcast %cst_1 : f32 to vector<2x1024xf32>
    %4 = arith.maximumf %2, %3 : vector<2x1024xf32>
    %c0_2 = arith.constant 0 : index
    %c0_3 = arith.constant 0 : index
    %5 = vector.load %arg2[%c0_2, %c0_3] : memref<2x1024xf32, #tpu.memory_space<vmem>>, vector<2x1024xf32>
    tpu.vector_store %arg2[%c0_2, %c0_3], %4 {strides = array<i32>} : memref<2x1024xf32, #tpu.memory_space<vmem>>, vector<2x1024xf32>,
    return
  }
  func.func @transform_0(%arg0: i32) -> (i32, i32) {
    %c0_i32 = arith.constant 0 : i32
    %c0_i32_0 = arith.constant 0 : i32
    return %arg0, %c0_i32 : i32, i32
  }
  func.func @transform_1(%arg0: i32) -> (i32, i32) {
    %c0_i32 = arith.constant 0 : i32
    %c0_i32_0 = arith.constant 0 : i32
    return %arg0, %c0_i32 : i32, i32
  }
}

</mosaic_0001>

<bundles_post_ra>
// kernel: tpu_custom_call.1
= control target key start
LH: loop header
LB: loop body
LE: loop exit
PB: predicated region body
PF: predicated region fallthrough
CT: control target
= control target key end

     0   :  { %6 = vsyncpa [#allocation3], 0  ;;  %s132_s0 = inlined_call_operand.hbm [shape: f32[2,1024], index: 0, kind: input, shape index: {}]   ;;  %s133_s1 = inlined_call_operand.hbm [shape: f32[2,1024], index: 1, kind: output, shape index: {}]  }
   0x1   :  { %7 = vsyncpa [#allocation4], 0  ;;  %s96_s6 = smov [#allocation2]   ;;  %s48_s10 = scalar_lea.hbm %s132_s0, 256 }
   0x2   :  { %s14_s7 = sshll.u32 %s96_s6, 4  ;;  %p49_p0 = scmp.ne.s32.totalorder %s132_s0, %s48_s10  ;;  %s15_s7 = int_to_ptr.vmem [resolvable:$true] %s14_s7 }
   0x3   :  { %p52_p1 = scmp.lt.u32.totalorder %s48_s10, %s132_s0 }
   0x5   :  { %p54_p2 = pnand %p52_p1, %p49_p0 }
   0x7   :  { %57 = shalt.err (!%p54_p2)
}
   0x8   :  { %s58_s15 = scalar_lea.vmem %s15_s7, 256  ;;  %p63_p4 = scmp.lt.s32.totalorder %s15_s7, %s15_s7 }
   0x9   :  { %p59_p3 = scmp.ne.s32.totalorder %s15_s7, %s58_s15  ;;  %p64_p5 = scmp.lt.s32.totalorder %s58_s15, %s58_s15 }
   0xb   :  { %p65_p6 = por %p64_p5, %p63_p4 }
   0xd   :  { %p66_p7 = pnand %p65_p6, %p59_p3 }
   0xf   :  { %69 = shalt.err (!%p66_p7)
}
  0x10   :  { %17 = dma.hbm_to_vmem [thread:$0]  %s132_s0, 256, %s15_s7, [#allocation3]  }
  0x11   :  { %92 = dma.done.wait [#allocation3], 256  }
  0x12   :  { %93 = vsyncadd [#allocation3], 4294967040  ;;  %v21_v0 = vld [vmem:[#allocation2] sm:$0xff]  ;;  %v22_v1 = vld [vmem:[#allocation2 + $0x8] sm:$0xff]  ;;  %s97_s18 = smov [#allocation5]  }
  0x13   :  { %s35_s19 = sshll.u32 %s97_s18, 4  ;;  %v44_v2 = vadd.f32 -0.5, %v21_v0  ;;  %v45_v3 = vadd.f32 -0.5, %v22_v1  ;;  %s36_s19 = int_to_ptr.vmem [resolvable:$true] %s35_s19 }
  0x14   :  { %s70_s20 = scalar_lea.vmem %s36_s19, 256  ;;  %p75_p9 = scmp.lt.s32.totalorder %s36_s19, %s36_s19 }
  0x15   :  { %v25_v4 = vmax.f32 %v44_v2, 0.0  ;;  %v26_v5 = vmax.f32 %v45_v3, 0.0  ;;  %p71_p8 = scmp.ne.s32.totalorder %s36_s19, %s70_s20  ;;  %p76_p10 = scmp.lt.s32.totalorder %s70_s20, %s70_s20 }
  0x17   :  { %27 = vst [vmem:[#allocation5] sm:$0xff] %v25_v4  ;;  %28 = vst [vmem:[#allocation5 + $0x8] sm:$0xff] %v26_v5  ;;  %p77_p11 = por %p76_p10, %p75_p9 }
  0x19   :  { %p78_p12 = pnand %p77_p11, %p71_p8 }
  0x1b   :  { %81 = shalt.err (!%p78_p12)
}
  0x1c   :  { %s82_s22 = scalar_lea.hbm %s133_s1, 256 }
  0x1d   :  { %p83_p13 = scmp.ne.s32.totalorder %s133_s1, %s82_s22  ;;  %p86_p0 = scmp.lt.u32.totalorder %s82_s22, %s133_s1 }
  0x1f   :  { %p88_p1 = pnand %p86_p0, %p83_p13 }
  0x21   :  { %91 = shalt.err (!%p88_p1)
}
  0x22   :  { %38 = dma.vmem_to_hbm [thread:$0]  %s36_s19, 256, %s133_s1, [#allocation4]  }
  0x23   :  { %94 = dma.done.wait [#allocation4], 256  }
  0x24   :  { %95 = vsyncadd [#allocation4], 4294967040 }
  0x25   :  { %42 = vsyncpa [#allocation3], 1 }
  0x26   :  { %43 = vsyncpa [#allocation4], 1 }

</bundles_post_ra>
